<compile_context>
chip_gen: v6e
topology: v6e:2x2x1
jax: 0.10.0
libtpu: 0.0.40
codegen_flags: <defaults>
</compile_context>

<pallas_src>
import math

import jax
import jax.numpy as jnp
import numpy as np
from jax.experimental import pallas as pl
from jax.experimental.pallas import tpu as pltpu

BN_EPS = 1e-5  # PyTorch BatchNorm1d default eps


def _round_up(x: int, m: int) -> int:
    return ((x + m - 1) // m) * m


# -----------------------------------------------------------------------------
# Pallas kernel
# -----------------------------------------------------------------------------
def _make_hypernet_kernel(num_layers: int):
    """Fused HyperNet forward kernel.

    Ref ordering:
      x,
      [gamma_k, W_k(bf16), b_eff_k] * num_layers,
      W_out(bf16), b_out,
      W_proj_tile(bf16, pre-scaled), b_proj_tile(pre-scaled),
      out_tile
    """

    def kernel(*refs):
        x_ref = refs[0]
        o_ref = refs[-1]
        prefs = refs[1:-1]

        x = x_ref[...]  # already f32
        idx = 0
        for _ in range(num_layers):
            gamma = prefs[idx][...]        # (1, in_dim)  f32
            w = prefs[idx + 1][...]        # (in_dim, out_dim) bf16
            b_eff = prefs[idx + 2][...]    # (1, out_dim) f32 (= beta @ W + b)
            idx += 3

            # BatchNorm1d (training mode: batch mean / biased variance), f32.
            mean = jnp.mean(x, axis=0, keepdims=True)
            var = jnp.mean((x - mean) ** 2, axis=0, keepdims=True)
            xh = (x - mean) * (gamma * jax.lax.rsqrt(var + BN_EPS))

            # Linear (bf16 operands, f32 accumulate) + folded bias + ReLU.
            x = jnp.dot(xh.astype(jnp.bfloat16), w,
                        preferred_element_type=jnp.float32) + b_eff
            x = jnp.maximum(x, 0.0)

        w_out = prefs[idx][...]       # (hidden, embed_dim)  bf16
        b_out = prefs[idx + 1][...]   # (1, embed_dim)       f32
        w_proj = prefs[idx + 2][...]  # (embed_dim, TILE_N)  bf16, pre-scaled
        b_proj = prefs[idx + 3][...]  # (1, TILE_N)          f32, pre-scaled

        # features = self.out(x)
        feat = jnp.dot(x.astype(jnp.bfloat16), w_out,
                       preferred_element_type=jnp.float32) + b_out

        # All projection heads fused; 1/sqrt(embed_dim) already folded into
        # w_proj / b_proj in the wrapper.
        o_ref[...] = jnp.dot(feat.astype(jnp.bfloat16), w_proj,
                             preferred_element_type=jnp.float32) + b_proj

    return kernel


# -----------------------------------------------------------------------------
# Python wrapper
# -----------------------------------------------------------------------------
def hypernet_forward(x, params, head_sizes, *, tile_n_max=512):
    """Run the HyperNet forward pass; returns a list of per-head outputs."""
    layers = params["layers"]  # list of (gamma, beta, W, b), all f32
    num_layers = len(layers)
    embed_dim = params["w_out"].shape[1]
    batch = x.shape[0]

    # ---- parameter preprocessing (constant folding / dtype prep) ----------
    flat_inputs = [x.astype(jnp.float32)]
    for (gamma, beta, w, b) in layers:
        b_eff = beta @ w + b  # fold BN beta + linear bias (exact, f32)
        flat_inputs += [gamma, w.astype(jnp.bfloat16), b_eff]
    flat_inputs += [params["w_out"].astype(jnp.bfloat16), params["b_out"]]

    total_out = params["w_proj"].shape[1]
    scale = 1.0 / math.sqrt(embed_dim)

    padded_total = _round_up(total_out, 128)
    tile_n = min(tile_n_max, padded_total)
    padded_total = _round_up(padded_total, tile_n)
    n_tiles = padded_total // tile_n

    w_proj = (params["w_proj"] * scale).astype(jnp.bfloat16)
    b_proj = params["b_proj"] * scale
    pad = padded_total - total_out
    if pad:
        # zero-fill padded columns so they are inert (sliced off below)
        w_proj = jnp.pad(w_proj, ((0, 0), (0, pad)))
        b_proj = jnp.pad(b_proj, ((0, 0), (0, pad)))
    flat_inputs += [w_proj, b_proj]

    # ---- block specs --------------------------------------------------------
    def full_spec(arr):
        # whole array resident per grid step (tiny MLP params + activations)
        return pl.BlockSpec(arr.shape, lambda j: (0,) * arr.ndim)

    in_specs = [full_spec(a) for a in flat_inputs[:-2]]
    in_specs += [
        pl.BlockSpec((embed_dim, tile_n), lambda j: (0, j)),  # w_proj tile
        pl.BlockSpec((1, tile_n), lambda j: (0, j)),          # b_proj tile
    ]
    out_spec = pl.BlockSpec((batch, tile_n), lambda j: (0, j))

    out = pl.pallas_call(
        _make_hypernet_kernel(num_layers),
        out_shape=jax.ShapeDtypeStruct((batch, padded_total), jnp.float32),
        grid=(n_tiles,),
        in_specs=in_specs,
        out_specs=out_spec,
        compiler_params=pltpu.CompilerParams(
            dimension_semantics=("parallel",)),
    )(*flat_inputs)

    out = out[:, :total_out]

    # split the fused projection back into the per-head list that
    # MultiHeadLinearProjection.forward returns
    outs, off = [], 0
    for s in head_sizes:
        outs.append(out[:, off:off + s])
        off += s
    return outs


# -----------------------------------------------------------------------------
# Pure-JAX references (for correctness check)
# -----------------------------------------------------------------------------
def hypernet_reference_matched(x, params, head_sizes):
    """Same arithmetic path as the kernel (bf16 matmul operands, f32 accum)."""
    x = x.astype(jnp.float32)
    embed_dim = params["w_out"].shape[1]
    scale = 1.0 / math.sqrt(embed_dim)
    for (gamma, beta, w, b) in params["layers"]:
        b_eff = beta @ w + b
        mean = jnp.mean(x, axis=0, keepdims=True)
        var = jnp.mean((x - mean) ** 2, axis=0, keepdims=True)
        xh = (x - mean) * (gamma * jax.lax.rsqrt(var + BN_EPS))
        x = jnp.maximum(
            jnp.dot(xh.astype(jnp.bfloat16), w.astype(jnp.bfloat16),
                    preferred_element_type=jnp.float32) + b_eff, 0.0)
    feat = jnp.dot(x.astype(jnp.bfloat16),
                   params["w_out"].astype(jnp.bfloat16),
                   preferred_element_type=jnp.float32) + params["b_out"]
    w_proj = (params["w_proj"] * scale).astype(jnp.bfloat16)
    b_proj = params["b_proj"] * scale
    fused = jnp.dot(feat.astype(jnp.bfloat16), w_proj,
                    preferred_element_type=jnp.float32) + b_proj
    outs, off = [], 0
    for s in head_sizes:
        outs.append(fused[:, off:off + s])
        off += s
    return outs


def hypernet_reference_f32(x, params, head_sizes):
    """Exact PyTorch-semantics f32 reference (no bf16 quantization)."""
    x = x.astype(jnp.float32)
    for (gamma, beta, w, b) in params["layers"]:
        mean = jnp.mean(x, axis=0, keepdims=True)
        var = jnp.mean((x - mean) ** 2, axis=0, keepdims=True)
        x = (x - mean) / jnp.sqrt(var + BN_EPS) * gamma + beta
        x = jnp.maximum(x @ w + b, 0.0)
    feat = x @ params["w_out"] + params["b_out"]
    scale = 1.0 / math.sqrt(feat.shape[1])
    fused = (feat @ params["w_proj"] + params["b_proj"]) * scale
    outs, off = [], 0
    for s in head_sizes:
        outs.append(fused[:, off:off + s])
        off += s
    return outs


# -----------------------------------------------------------------------------
# Deterministic parameter construction (synthetic init — not a checkpoint)
# -----------------------------------------------------------------------------
def build_params(key, cfg):
    hidden = [cfg["hypernet_hidden_size"]] * cfg["hypernet_num_hidden_layers"]
    dims = [cfg["hypernet_input_dim"]] + hidden

    def linear(key, in_d, out_d):
        kw, kb = jax.random.split(key)
        bound = 1.0 / math.sqrt(in_d)
        w = jax.random.uniform(kw, (in_d, out_d), jnp.float32, -bound, bound)
        b = jax.random.uniform(kb, (1, out_d), jnp.float32, -bound, bound)
        return w, b

    keys = jax.random.split(key, 4 * len(hidden) + 2)
    ki = 0
    layers = []
    for k in range(len(hidden)):
        in_d, out_d = dims[k], dims[k + 1]
        gamma = 1.0 + 0.1 * jax.random.normal(keys[ki], (1, in_d), jnp.float32)
        beta = 0.1 * jax.random.normal(keys[ki + 1], (1, in_d), jnp.float32)
        w, b = linear(keys[ki + 2], in_d, out_d)
        ki += 4
        layers.append((gamma, beta, w, b))

    embed_dim = cfg["embedding_dim"]
    w_out, b_out = linear(keys[ki], hidden[-1], embed_dim)

    # num_parameters_lst exactly as in HyperNet.__init__
    head_sizes = []
    for i in range(1, cfg["num_joints"] + 1):
        head_sizes += [
            cfg["jointnet_hidden_size"] * i,
            cfg["jointnet_hidden_size"],
            cfg["jointnet_hidden_size"] * cfg["jointnet_output_dim"],
            cfg["jointnet_output_dim"],
        ]
    total_out = int(sum(head_sizes))
    w_proj, b_proj = linear(keys[ki + 1], embed_dim, total_out)

    params = dict(layers=layers, w_out=w_out, b_out=b_out,
                  w_proj=w_proj, b_proj=b_proj)
    return params, head_sizes


# -----------------------------------------------------------------------------
if __name__ == "__main__":
    cfg = dict(
        hypernet_input_dim=16,
        hypernet_hidden_size=32,
        hypernet_num_hidden_layers=2,
        embedding_dim=32,
        num_joints=2,
        jointnet_hidden_size=8,
        jointnet_output_dim=4,
    )
    batch = 8

    key = jax.random.PRNGKey(0)
    kx, kp = jax.random.split(key)
    x = jax.random.normal(kx, (batch, cfg["hypernet_input_dim"]), jnp.float32)
    params, head_sizes = build_params(kp, cfg)

    outs = hypernet_forward(x, params, head_sizes)
    outs = jax.block_until_ready(outs)

    # Tight check vs. a precision-matched reference (same bf16 matmul path).
    refs_m = hypernet_reference_matched(x, params, head_sizes)
    for o, r in zip(outs, refs_m):
        np.testing.assert_allclose(np.asarray(o), np.asarray(r),
                                   rtol=1e-2, atol=1e-2)

    # Looser check vs. the exact f32 PyTorch-semantics reference
    # (bf16 MXU operands introduce ~1% relative error).
    refs_f = hypernet_reference_f32(x, params, head_sizes)
    for o, r in zip(outs, refs_f):
        np.testing.assert_allclose(np.asarray(o), np.asarray(r),
                                   rtol=5e-2, atol=5e-2)

    print("KERNEL_OK")
</pallas_src>

<mosaic_0001>
module attributes {stable_mosaic.version = 11 : i64} {
  func.func @kernel(%arg0: i32, %arg1: memref<8x16xf32, #tpu.memory_space<vmem>>, %arg2: memref<1x16xf32, #tpu.memory_space<vmem>>, %arg3: memref<16x32xbf16, #tpu.memory_space<vmem>>, %arg4: memref<1x32xf32, #tpu.memory_space<vmem>>, %arg5: memref<1x32xf32, #tpu.memory_space<vmem>>, %arg6: memref<32x32xbf16, #tpu.memory_space<vmem>>, %arg7: memref<1x32xf32, #tpu.memory_space<vmem>>, %arg8: memref<32x32xbf16, #tpu.memory_space<vmem>>, %arg9: memref<1x32xf32, #tpu.memory_space<vmem>>, %arg10: memref<32x128xbf16, #tpu.memory_space<vmem>>, %arg11: memref<1x128xf32, #tpu.memory_space<vmem>>, %arg12: memref<8x128xf32, #tpu.memory_space<vmem>>) attributes {dimension_semantics = [#tpu.dimension_semantics<parallel>], iteration_bounds = array<i64: 1>, scalar_prefetch = 0 : i64, scratch_operands = 0 : i64, tpu.core_type = #tpu.core_type<tc>, window_params = [{pipeline_mode = #tpu.pipeline_mode<synchronous>, transform_indices = @transform_0, window_bounds = array<i64: 8, 16>}, {pipeline_mode = #tpu.pipeline_mode<synchronous>, transform_indices = @transform_1, window_bounds = array<i64: 1, 16>}, {pipeline_mode = #tpu.pipeline_mode<synchronous>, transform_indices = @transform_2, window_bounds = array<i64: 16, 32>}, {pipeline_mode = #tpu.pipeline_mode<synchronous>, transform_indices = @transform_3, window_bounds = array<i64: 1, 32>}, {pipeline_mode = #tpu.pipeline_mode<synchronous>, transform_indices = @transform_4, window_bounds = array<i64: 1, 32>}, {pipeline_mode = #tpu.pipeline_mode<synchronous>, transform_indices = @transform_5, window_bounds = array<i64: 32, 32>}, {pipeline_mode = #tpu.pipeline_mode<synchronous>, transform_indices = @transform_6, window_bounds = array<i64: 1, 32>}, {pipeline_mode = #tpu.pipeline_mode<synchronous>, transform_indices = @transform_7, window_bounds = array<i64: 32, 32>}, {pipeline_mode = #tpu.pipeline_mode<synchronous>, transform_indices = @transform_8, window_bounds = array<i64: 1, 32>}, {transform_indices = @transform_9, window_bounds = array<i64: 32, 128>}, {transform_indices = @transform_10, window_bounds = array<i64: 1, 128>}, {transform_indices = @transform_11, window_bounds = array<i64: 8, 128>}]} {
    %c0 = arith.constant 0 : index
    %c0_0 = arith.constant 0 : index
    %0 = vector.load %arg1[%c0, %c0_0] : memref<8x16xf32, #tpu.memory_space<vmem>>, vector<8x16xf32>
    %c0_1 = arith.constant 0 : index
    %c0_2 = arith.constant 0 : index
    %1 = vector.load %arg2[%c0_1, %c0_2] : memref<1x16xf32, #tpu.memory_space<vmem>>, vector<1x16xf32>
    %c0_3 = arith.constant 0 : index
    %c0_4 = arith.constant 0 : index
    %2 = vector.load %arg3[%c0_3, %c0_4] : memref<16x32xbf16, #tpu.memory_space<vmem>>, vector<16x32xbf16>
    %c0_5 = arith.constant 0 : index
    %c0_6 = arith.constant 0 : index
    %3 = vector.load %arg4[%c0_5, %c0_6] : memref<1x32xf32, #tpu.memory_space<vmem>>, vector<1x32xf32>
    %cst = arith.constant dense<0.000000e+00> : vector<16xf32>
    %4 = vector.multi_reduction <add>, %0, %cst [0] : vector<8x16xf32> to vector<16xf32>
    %5 = vector.shape_cast %4 : vector<16xf32> to vector<1x16xf32>
    %cst_7 = arith.constant 8.000000e+00 : f32
    %6 = vector.broadcast %cst_7 : f32 to vector<1x16xf32>
    %7 = arith.divf %5, %6 : vector<1x16xf32>
    %8 = vector.broadcast %7 : vector<1x16xf32> to vector<8x16xf32>
    %9 = arith.subf %0, %8 : vector<8x16xf32>
    %10 = arith.mulf %9, %9 : vector<8x16xf32>
    %cst_8 = arith.constant dense<0.000000e+00> : vector<16xf32>
    %11 = vector.multi_reduction <add>, %10, %cst_8 [0] : vector<8x16xf32> to vector<16xf32>
    %12 = vector.shape_cast %11 : vector<16xf32> to vector<1x16xf32>
    %cst_9 = arith.constant 8.000000e+00 : f32
    %13 = vector.broadcast %cst_9 : f32 to vector<1x16xf32>
    %14 = arith.divf %12, %13 : vector<1x16xf32>
    %15 = vector.broadcast %7 : vector<1x16xf32> to vector<8x16xf32>
    %16 = arith.subf %0, %15 : vector<8x16xf32>
    %cst_10 = arith.constant 9.99999974E-6 : f32
    %17 = vector.broadcast %cst_10 : f32 to vector<1x16xf32>
    %18 = arith.addf %14, %17 : vector<1x16xf32>
    %19 = math.rsqrt %18 : vector<1x16xf32>
    %20 = arith.mulf %1, %19 : vector<1x16xf32>
    %21 = vector.broadcast %20 : vector<1x16xf32> to vector<8x16xf32>
    %22 = arith.mulf %16, %21 : vector<8x16xf32>
    %23 = arith.truncf %22 : vector<8x16xf32> to vector<8x16xbf16>
    %cst_11 = arith.constant dense<0.000000e+00> : vector<8x32xf32>
    %24 = tpu.matmul %23, %2, %cst_11 {dimension_numbers = #tpu.dot_dimension_numbers<[1], [0], [0], [1], [0, 0, 1, 1], [], []>} : vector<8x16xbf16>, vector<16x32xbf16>, vector<8x32xf32> -> vector<8x32xf32>
    %25 = vector.broadcast %3 : vector<1x32xf32> to vector<8x32xf32>
    %26 = arith.addf %24, %25 : vector<8x32xf32>
    %cst_12 = arith.constant 0.000000e+00 : f32
    %27 = vector.broadcast %cst_12 : f32 to vector<8x32xf32>
    %28 = arith.maximumf %26, %27 : vector<8x32xf32>
    %c0_13 = arith.constant 0 : index
    %c0_14 = arith.constant 0 : index
    %29 = vector.load %arg5[%c0_13, %c0_14] : memref<1x32xf32, #tpu.memory_space<vmem>>, vector<1x32xf32>
    %c0_15 = arith.constant 0 : index
    %c0_16 = arith.constant 0 : index
    %30 = vector.load %arg6[%c0_15, %c0_16] : memref<32x32xbf16, #tpu.memory_space<vmem>>, vector<32x32xbf16>
    %c0_17 = arith.constant 0 : index
    %c0_18 = arith.constant 0 : index
    %31 = vector.load %arg7[%c0_17, %c0_18] : memref<1x32xf32, #tpu.memory_space<vmem>>, vector<1x32xf32>
    %cst_19 = arith.constant dense<0.000000e+00> : vector<32xf32>
    %32 = vector.multi_reduction <add>, %28, %cst_19 [0] : vector<8x32xf32> to vector<32xf32>
    %33 = vector.shape_cast %32 : vector<32xf32> to vector<1x32xf32>
    %cst_20 = arith.constant 8.000000e+00 : f32
    %34 = vector.broadcast %cst_20 : f32 to vector<1x32xf32>
    %35 = arith.divf %33, %34 : vector<1x32xf32>
    %36 = vector.broadcast %35 : vector<1x32xf32> to vector<8x32xf32>
    %37 = arith.subf %28, %36 : vector<8x32xf32>
    %38 = arith.mulf %37, %37 : vector<8x32xf32>
    %cst_21 = arith.constant dense<0.000000e+00> : vector<32xf32>
    %39 = vector.multi_reduction <add>, %38, %cst_21 [0] : vector<8x32xf32> to vector<32xf32>
    %40 = vector.shape_cast %39 : vector<32xf32> to vector<1x32xf32>
    %cst_22 = arith.constant 8.000000e+00 : f32
    %41 = vector.broadcast %cst_22 : f32 to vector<1x32xf32>
    %42 = arith.divf %40, %41 : vector<1x32xf32>
    %43 = vector.broadcast %35 : vector<1x32xf32> to vector<8x32xf32>
    %44 = arith.subf %28, %43 : vector<8x32xf32>
    %cst_23 = arith.constant 9.99999974E-6 : f32
    %45 = vector.broadcast %cst_23 : f32 to vector<1x32xf32>
    %46 = arith.addf %42, %45 : vector<1x32xf32>
    %47 = math.rsqrt %46 : vector<1x32xf32>
    %48 = arith.mulf %29, %47 : vector<1x32xf32>
    %49 = vector.broadcast %48 : vector<1x32xf32> to vector<8x32xf32>
    %50 = arith.mulf %44, %49 : vector<8x32xf32>
    %51 = arith.truncf %50 : vector<8x32xf32> to vector<8x32xbf16>
    %cst_24 = arith.constant dense<0.000000e+00> : vector<8x32xf32>
    %52 = tpu.matmul %51, %30, %cst_24 {dimension_numbers = #tpu.dot_dimension_numbers<[1], [0], [0], [1], [0, 0, 1, 1], [], []>} : vector<8x32xbf16>, vector<32x32xbf16>, vector<8x32xf32> -> vector<8x32xf32>
    %53 = vector.broadcast %31 : vector<1x32xf32> to vector<8x32xf32>
    %54 = arith.addf %52, %53 : vector<8x32xf32>
    %cst_25 = arith.constant 0.000000e+00 : f32
    %55 = vector.broadcast %cst_25 : f32 to vector<8x32xf32>
    %56 = arith.maximumf %54, %55 : vector<8x32xf32>
    %c0_26 = arith.constant 0 : index
    %c0_27 = arith.constant 0 : index
    %57 = vector.load %arg8[%c0_26, %c0_27] : memref<32x32xbf16, #tpu.memory_space<vmem>>, vector<32x32xbf16>
    %c0_28 = arith.constant 0 : index
    %c0_29 = arith.constant 0 : index
    %58 = vector.load %arg9[%c0_28, %c0_29] : memref<1x32xf32, #tpu.memory_space<vmem>>, vector<1x32xf32>
    %c0_30 = arith.constant 0 : index
    %c0_31 = arith.constant 0 : index
    %59 = vector.load %arg10[%c0_30, %c0_31] : memref<32x128xbf16, #tpu.memory_space<vmem>>, vector<32x128xbf16>
    %c0_32 = arith.constant 0 : index
    %c0_33 = arith.constant 0 : index
    %60 = vector.load %arg11[%c0_32, %c0_33] : memref<1x128xf32, #tpu.memory_space<vmem>>, vector<1x128xf32>
    %61 = arith.truncf %56 : vector<8x32xf32> to vector<8x32xbf16>
    %cst_34 = arith.constant dense<0.000000e+00> : vector<8x32xf32>
    %62 = tpu.matmul %61, %57, %cst_34 {dimension_numbers = #tpu.dot_dimension_numbers<[1], [0], [0], [1], [0, 0, 1, 1], [], []>} : vector<8x32xbf16>, vector<32x32xbf16>, vector<8x32xf32> -> vector<8x32xf32>
    %63 = vector.broadcast %58 : vector<1x32xf32> to vector<8x32xf32>
    %64 = arith.addf %62, %63 : vector<8x32xf32>
    %65 = arith.truncf %64 : vector<8x32xf32> to vector<8x32xbf16>
    %cst_35 = arith.constant dense<0.000000e+00> : vector<8x128xf32>
    %66 = tpu.matmul %65, %59, %cst_35 {dimension_numbers = #tpu.dot_dimension_numbers<[1], [0], [0], [1], [0, 0, 1, 1], [], []>} : vector<8x32xbf16>, vector<32x128xbf16>, vector<8x128xf32> -> vector<8x128xf32>
    %67 = vector.broadcast %60 : vector<1x128xf32> to vector<8x128xf32>
    %68 = arith.addf %66, %67 : vector<8x128xf32>
    %c0_36 = arith.constant 0 : index
    %c0_37 = arith.constant 0 : index
    %69 = vector.load %arg12[%c0_36, %c0_37] : memref<8x128xf32, #tpu.memory_space<vmem>>, vector<8x128xf32>
    tpu.vector_store %arg12[%c0_36, %c0_37], %68 {strides = array<i32>} : memref<8x128xf32, #tpu.memory_space<vmem>>, vector<8x128xf32>,
    return
  }
  func.func @transform_0(%arg0: i32) -> (i32, i32) {
    %c0_i32 = arith.constant 0 : i32
    %c0_i32_0 = arith.constant 0 : i32
    %c0_i32_1 = arith.constant 0 : i32
    return %c0_i32, %c0_i32_0 : i32, i32
  }
  func.func @transform_1(%arg0: i32) -> (i32, i32) {
    %c0_i32 = arith.constant 0 : i32
    %c0_i32_0 = arith.constant 0 : i32
    %c0_i32_1 = arith.constant 0 : i32
    return %c0_i32, %c0_i32_0 : i32, i32
  }
  func.func @transform_2(%arg0: i32) -> (i32, i32) {
    %c0_i32 = arith.constant 0 : i32
    %c0_i32_0 = arith.constant 0 : i32
    %c0_i32_1 = arith.constant 0 : i32
    return %c0_i32, %c0_i32_0 : i32, i32
  }
  func.func @transform_3(%arg0: i32) -> (i32, i32) {
    %c0_i32 = arith.constant 0 : i32
    %c0_i32_0 = arith.constant 0 : i32
    %c0_i32_1 = arith.constant 0 : i32
    return %c0_i32, %c0_i32_0 : i32, i32
  }
  func.func @transform_4(%arg0: i32) -> (i32, i32) {
    %c0_i32 = arith.constant 0 : i32
    %c0_i32_0 = arith.constant 0 : i32
    %c0_i32_1 = arith.constant 0 : i32
    return %c0_i32, %c0_i32_0 : i32, i32
  }
  func.func @transform_5(%arg0: i32) -> (i32, i32) {
    %c0_i32 = arith.constant 0 : i32
    %c0_i32_0 = arith.constant 0 : i32
    %c0_i32_1 = arith.constant 0 : i32
    return %c0_i32, %c0_i32_0 : i32, i32
  }
  func.func @transform_6(%arg0: i32) -> (i32, i32) {
    %c0_i32 = arith.constant 0 : i32
    %c0_i32_0 = arith.constant 0 : i32
    %c0_i32_1 = arith.constant 0 : i32
    return %c0_i32, %c0_i32_0 : i32, i32
  }
  func.func @transform_7(%arg0: i32) -> (i32, i32) {
    %c0_i32 = arith.constant 0 : i32
    %c0_i32_0 = arith.constant 0 : i32
    %c0_i32_1 = arith.constant 0 : i32
    return %c0_i32, %c0_i32_0 : i32, i32
  }
  func.func @transform_8(%arg0: i32) -> (i32, i32) {
    %c0_i32 = arith.constant 0 : i32
    %c0_i32_0 = arith.constant 0 : i32
    %c0_i32_1 = arith.constant 0 : i32
    return %c0_i32, %c0_i32_0 : i32, i32
  }
  func.func @transform_9(%arg0: i32) -> (i32, i32) {
    %c0_i32 = arith.constant 0 : i32
    %c0_i32_0 = arith.constant 0 : i32
    return %c0_i32, %arg0 : i32, i32
  }
  func.func @transform_10(%arg0: i32) -> (i32, i32) {
    %c0_i32 = arith.constant 0 : i32
    %c0_i32_0 = arith.constant 0 : i32
    return %c0_i32, %arg0 : i32, i32
  }
  func.func @transform_11(%arg0: i32) -> (i32, i32) {
    %c0_i32 = arith.constant 0 : i32
    %c0_i32_0 = arith.constant 0 : i32
    return %c0_i32, %arg0 : i32, i32
  }
}

</mosaic_0001>

<bundles_post_ra>
// kernel: tpu_custom_call.1
= control target key start
LH: loop header
LB: loop body
LE: loop exit
PB: predicated region body
PF: predicated region fallthrough
CT: control target
= control target key end

     0   :  { %16 = vsyncpa [#allocation3], 0  ;;  %s932_s0 = inlined_call_operand.hbm [shape: f32[8,16], index: 0, kind: input, shape index: {}]   ;;  %s933_s1 = inlined_call_operand.hbm [shape: f32[1,16], index: 1, kind: input, shape index: {}]   ;;  %s934_s2 = inlined_call_operand.hbm [shape: bf16[16,32], index: 2, kind: input, shape index: {}]   ;;  %s935_s3 = inlined_call_operand.hbm [shape: f32[1,32], index: 3, kind: input, shape index: {}]   ;;  %s936_s4 = inlined_call_operand.hbm [shape: f32[1,32], index: 4, kind: input, shape index: {}]   ;;  %s937_s5 = inlined_call_operand.hbm [shape: bf16[32,32], index: 5, kind: input, shape index: {}]   ;;  %s938_s6 = inlined_call_operand.hbm [shape: f32[1,32], index: 6, kind: input, shape index: {}]   ;;  %s939_s7 = inlined_call_operand.hbm [shape: bf16[32,32], index: 7, kind: input, shape index: {}]   ;;  %s940_s8 = inlined_call_operand.hbm [shape: f32[1,32], index: 8, kind: input, shape index: {}]   ;;  %s941_s9 = inlined_call_operand.vmem [shape: bf16[32,128], index: 9, kind: input, shape index: {}]   ;;  %s942_s10 = inlined_call_operand.vmem [shape: f32[1,128], index: 10, kind: input, shape index: {}]   ;;  %s943_s11 = inlined_call_operand.hbm [shape: f32[8,128], index: 11, kind: output, shape index: {}]  }
   0x1   :  { %17 = vsyncpa [#allocation6], 0 }
   0x2   :  { %18 = vsyncpa [#allocation9], 0 }
   0x3   :  { %19 = vsyncpa [#allocation12], 0 }
   0x4   :  { %20 = vsyncpa [#allocation15], 0 }
   0x5   :  { %21 = vsyncpa [#allocation4], 0  ;;  %s787_s17 = smov [#allocation5]   ;;  %s788_s19 = smov [#allocation8]  }
   0x6   :  { %s38_s18 = sshll.u32 %s787_s17, 4  ;;  %s60_s20 = sshll.u32 %s788_s19, 4  ;;  %s39_s18 = int_to_ptr.vmem [resolvable:$true] %s38_s18  ;;  %s61_s20 = int_to_ptr.vmem [resolvable:$true] %s60_s20 }
   0x7   :  { %s583_s21 = scalar_lea.vmem %s39_s18, 16  ;;  %s587_s22 = scalar_lea.vmem %s39_s18, 32 }
   0x8   :  { %p584_p0 = scmp.ne.s32.totalorder %s39_s18, %s583_s21  ;;  %p588_p1 = scmp.lt.s32.totalorder %s39_s18, %s39_s18 }
   0x9   :  { %p589_p2 = scmp.lt.s32.totalorder %s587_s22, %s583_s21 }
   0xb   :  { %p590_p3 = por %p589_p2, %p588_p1 }
   0xd   :  { %p591_p4 = pnand %p590_p3, %p584_p0 }
   0xf   :  { %594 = shalt.err (!%p591_p4)
}
  0x10   :  { %41 = dma.hbm_to_vmem [thread:$0]  %s933_s1, 16, %s39_s18, [#allocation6]  }
  0x11   :  { %s603_s25 = scalar_lea.vmem %s61_s20, 16  ;;  %s607_s26 = scalar_lea.vmem %s61_s20, 32 }
  0x12   :  { %p604_p5 = scmp.ne.s32.totalorder %s61_s20, %s603_s25  ;;  %p608_p6 = scmp.lt.s32.totalorder %s61_s20, %s61_s20 }
  0x13   :  { %p609_p7 = scmp.lt.s32.totalorder %s607_s26, %s603_s25 }
  0x15   :  { %p610_p8 = por %p609_p7, %p608_p6 }
  0x17   :  { %p611_p9 = pnand %p610_p8, %p604_p5 }
  0x19   :  { %614 = shalt.err (!%p611_p9)
}
  0x1a   :  { %63 = dma.hbm_to_vmem [thread:$0]  %s935_s3, 16, %s61_s20, [#allocation9]  }
  0x1b   :  { %s789_s29 = smov [#allocation11]   ;;  %s790_s12 = smov [#allocation14]  }
  0x1c   :  { %s79_s30 = sshll.u32 %s789_s29, 4  ;;  %s101_s13 = sshll.u32 %s790_s12, 4  ;;  %s80_s30 = int_to_ptr.vmem [resolvable:$true] %s79_s30  ;;  %s102_s13 = int_to_ptr.vmem [resolvable:$true] %s101_s13 }
  0x1d   :  { %s623_s14 = scalar_lea.vmem %s80_s30, 256  ;;  %p628_p11 = scmp.lt.s32.totalorder %s80_s30, %s80_s30 }
  0x1e   :  { %p624_p10 = scmp.ne.s32.totalorder %s80_s30, %s623_s14  ;;  %p629_p12 = scmp.lt.s32.totalorder %s623_s14, %s623_s14 }
  0x20   :  { %p630_p13 = por %p629_p12, %p628_p11 }
  0x22   :  { %p631_p0 = pnand %p630_p13, %p624_p10 }
  0x24   :  { %634 = shalt.err (!%p631_p0)
}
  0x25   :  { %s791_s1 = smov 64   ;;  %s792_s15 = smov 4  }
  0x26   :  { %85 = dma.hbm_to_vmem [thread:$0]  %s937_s5, 256, %s80_s30, [#allocation12], %s791_s1, %s791_s1, %s792_s15  }
  0x27   :  { %s643_s17 = scalar_lea.vmem %s102_s13, 256  ;;  %p648_p2 = scmp.lt.s32.totalorder %s102_s13, %s102_s13 }
  0x28   :  { %p644_p1 = scmp.ne.s32.totalorder %s102_s13, %s643_s17  ;;  %p649_p3 = scmp.lt.s32.totalorder %s643_s17, %s643_s17 }
  0x2a   :  { %p650_p4 = por %p649_p3, %p648_p2 }
  0x2c   :  { %p651_p5 = pnand %p650_p4, %p644_p1 }
  0x2e   :  { %654 = shalt.err (!%p651_p5)
}
  0x2f   :  { %107 = dma.hbm_to_vmem [thread:$0]  %s939_s7, 256, %s102_s13, [#allocation15], %s791_s1, %s791_s1, %s792_s15  }
  0x30   :  { %s793_s20 = smov [#allocation2]   ;;  %s794_s22 = smov [#allocation7]  }
  0x31   :  { %s28_s21 = sshll.u32 %s793_s20, 4  ;;  %s47_s23 = sshll.u32 %s794_s22, 4  ;;  %s29_s21 = int_to_ptr.vmem [resolvable:$true] %s28_s21  ;;  %s48_s23 = int_to_ptr.vmem [resolvable:$true] %s47_s23 }
  0x32   :  { %s663_s5 = scalar_lea.vmem %s29_s21, 128  ;;  %p668_p7 = scmp.lt.s32.totalorder %s29_s21, %s29_s21 }
  0x33   :  { %p664_p6 = scmp.ne.s32.totalorder %s29_s21, %s663_s5  ;;  %p669_p8 = scmp.lt.s32.totalorder %s663_s5, %s663_s5 }
  0x35   :  { %p670_p9 = por %p669_p8, %p668_p7 }
  0x37   :  { %p671_p10 = pnand %p670_p9, %p664_p6 }
  0x39   :  { %674 = shalt.err (!%p671_p10)
}
  0x3a   :  { %31 = dma.hbm_to_vmem [thread:$0]  %s932_s0, 128, %s29_s21, [#allocation3]  }
  0x3b   :  { %s683_s26 = scalar_lea.vmem %s48_s23, 128  ;;  %p688_p12 = scmp.lt.s32.totalorder %s48_s23, %s48_s23 }
  0x3c   :  { %p684_p11 = scmp.ne.s32.totalorder %s48_s23, %s683_s26  ;;  %p689_p13 = scmp.lt.s32.totalorder %s683_s26, %s683_s26 }
  0x3e   :  { %p690_p0 = por %p689_p13, %p688_p12 }
  0x40   :  { %p691_p1 = pnand %p690_p0, %p684_p11 }
  0x42   :  { %694 = shalt.err (!%p691_p1)
}
  0x43   :  { %53 = dma.hbm_to_vmem [thread:$0]  %s934_s2, 128, %s48_s23, [#allocation6], %s791_s1, %s791_s1, %s792_s15  }
  0x44   :  { %s795_s28 = smov [#allocation10]   ;;  %s796_s30 = smov [#allocation13]  }
  0x45   :  { %s70_s29 = sshll.u32 %s795_s28, 4  ;;  %s92_s12 = sshll.u32 %s796_s30, 4  ;;  %s71_s29 = int_to_ptr.vmem [resolvable:$true] %s70_s29  ;;  %s93_s12 = int_to_ptr.vmem [resolvable:$true] %s92_s12 }
  0x46   :  { %s703_s0 = scalar_lea.vmem %s71_s29, 16  ;;  %s707_s13 = scalar_lea.vmem %s71_s29, 32 }
  0x47   :  { %p704_p2 = scmp.ne.s32.totalorder %s71_s29, %s703_s0  ;;  %p708_p3 = scmp.lt.s32.totalorder %s71_s29, %s71_s29 }
  0x48   :  { %p709_p4 = scmp.lt.s32.totalorder %s707_s13, %s703_s0 }
  0x4a   :  { %p710_p5 = por %p709_p4, %p708_p3 }
  0x4c   :  { %p711_p6 = pnand %p710_p5, %p704_p2 }
  0x4e   :  { %714 = shalt.err (!%p711_p6)
}
  0x4f   :  { %73 = dma.hbm_to_vmem [thread:$0]  %s936_s4, 16, %s71_s29, [#allocation9]  }
  0x50   :  { %s723_s3 = scalar_lea.vmem %s93_s12, 16  ;;  %s727_s2 = scalar_lea.vmem %s93_s12, 32 }
  0x51   :  { %p724_p7 = scmp.ne.s32.totalorder %s93_s12, %s723_s3  ;;  %p728_p8 = scmp.lt.s32.totalorder %s93_s12, %s93_s12 }
  0x52   :  { %p729_p9 = scmp.lt.s32.totalorder %s727_s2, %s723_s3 }
  0x54   :  { %p730_p10 = por %p729_p9, %p728_p8 }
  0x56   :  { %p731_p11 = pnand %p730_p10, %p724_p7 }
  0x58   :  { %734 = shalt.err (!%p731_p11)
}
  0x59   :  { %95 = dma.hbm_to_vmem [thread:$0]  %s938_s6, 16, %s93_s12, [#allocation12]  }
  0x5a   :  { %s797_s17 = smov [#allocation16]  }
  0x5b   :  { %s114_s18 = sshll.u32 %s797_s17, 4  ;;  %s115_s18 = int_to_ptr.vmem [resolvable:$true] %s114_s18 }
  0x5c   :  { %s743_s19 = scalar_lea.vmem %s115_s18, 16  ;;  %s747_s20 = scalar_lea.vmem %s115_s18, 32 }
  0x5d   :  { %p744_p12 = scmp.ne.s32.totalorder %s115_s18, %s743_s19  ;;  %p748_p13 = scmp.lt.s32.totalorder %s115_s18, %s115_s18 }
  0x5e   :  { %p749_p0 = scmp.lt.s32.totalorder %s747_s20, %s743_s19 }
  0x60   :  { %p750_p1 = por %p749_p0, %p748_p13 }
  0x62   :  { %p751_p2 = pnand %p750_p1, %p744_p12 }
  0x64   :  { %754 = shalt.err (!%p751_p2)
}
  0x65   :  { %117 = dma.hbm_to_vmem [thread:$0]  %s940_s8, 16, %s115_s18, [#allocation15]  }
  0x66   :  { %775 = dma.done.wait [#allocation3], 128  }
  0x67   :  { %776 = vsyncadd [#allocation3], 4294967168 }
  0x68   :  { %777 = dma.done.wait [#allocation6], 144  }
  0x69   :  { %778 = vsyncadd [#allocation6], 4294967152 }
  0x6a   :  { %779 = dma.done.wait [#allocation9], 32  }
  0x6b   :  { %780 = vsyncadd [#allocation9], 4294967264 }
  0x6c   :  { %781 = dma.done.wait [#allocation12], 272  }
  0x6d   :  { %782 = vsyncadd [#allocation12], 4294967024 }
  0x6e   :  { %783 = dma.done.wait [#allocation15], 272  }
  0x6f   :  { %784 = vsyncadd [#allocation15], 4294967024  ;;  %v798_v0 = vmov 0.0   ;;  %vm799_vm0 = vmmov 0   ;;  %vm155_vm1 = vcmask 130048   ;;  %v564_v1 = vld [vmem:[#allocation7] sm:$0xff]   ;;  %v179_v22 = vlaneseq }
  0x70   :  { %520 = vmatprep.subr.bf16.mxu0 %v798_v0  ;;  %522 = vmatprep.mubr.msk.bf16.mxu0 %vm799_vm0, %v798_v0  ;;  %v150_v2 = vld [vmem:[#allocation2] sm:$0xff]  ;;  %v151_v24 = vld [vmem:[#allocation5] sm:$0x1]  ;;  %v566_v32 = vld [vmem:[#allocation11] sm:$0xff]   ;;  %vm248_vm2 = vcmask 261120   ;;  %s800_s25 = smov [#allocation17]  }
  0x71   :  { %526 = vmatprep.subr.bf16.mxu1 %v798_v0  ;;  %530 = vmatprep.mubr.msk.bf16.mxu1 %vm799_vm0, %v798_v0  ;;  %v156_v3 = vsel %vm155_vm1, %v150_v2, 0.0  ;;  %v180_v23 = vshrl.u32 %v179_v22, 7  ;;  %v565_v31 = vld [vmem:[#allocation11 + $0x8] sm:$0xff]   ;;  %v567_v33 = vld [vmem:[#allocation14 + $0x8] sm:$0xff]   ;;  %s481_s26 = sshll.u32 %s800_s25, 4  ;;  %s482_s26 = int_to_ptr.vmem [resolvable:$true] %s481_s26 }
  0x72   :  { %521 = vmatpush3.bf16.msra.mxu0 %v564_v1  ;;  %v157_v4 = vrot.slane %v156_v3, 4  ;;  %527 = vmatpush3.bf16.msra.mxu1 %v565_v31  ;;  %v494_v34 = vld [vmem:[#allocation8] ss:$0 sm:$0xff]  ;;  %v242_v60 = vld [vmem:[#allocation10] sm:$0x1]  ;;  %p760_p4 = scmp.lt.s32.totalorder %s482_s26, %s482_s26 }
  0x73   :  { %534 = vmatprep.subr.bf16.mxu0 %v798_v0  ;;  %v181_v25 = vsub.s32 0, %v180_v23  ;;  %528 = vmatprep.subr.bf16.mxu1 %v798_v0 }
  0x74   :  { %v158_v5 = vadd.f32 %v157_v4, %v156_v3  ;;  %v568_v3 = vld [vmem:[#allocation14] sm:$0xff]  }
  0x75   :  { %v569_v4 = vld [vmem:[%s941_s9 + $0x8] sm:$0xff]  }
  0x76   :  { %v159_v6 = vrot.slane %v158_v5, 2  ;;  %529 = vmatpush3.bf16.msra.mxu1 %v566_v32 }
  0x77   :  { %542 = vmatprep.subr.bf16.mxu1 %v798_v0 }
  0x78   :  { %v160_v7 = vadd.f32 %v159_v6, %v158_v5  ;;  %v497_v5 = vld [vmem:[#allocation13] ss:$0 sm:$0xff] }
  0x7a   :  { %v161_v8 = vrot.slane %v160_v7, 1 }
  0x7c   :  { %v162_v9 = vadd.f32 %v161_v8, %v160_v7 }
  0x7e   :  { %v164_v10 = vmul.f32 0.125, %v162_v9 }
  0x80   :  { %v165_v11 = vsub.f32 %v150_v2, %v164_v10 }
  0x82   :  { %v166_v12 = vmul.f32 %v165_v11, %v165_v11 }
  0x84   :  { %v167_v13 = vsel %vm155_vm1, %v166_v12, 0.0 }
  0x85   :  { %v168_v14 = vrot.slane %v167_v13, 4 }
  0x87   :  { %v169_v15 = vadd.f32 %v168_v14, %v167_v13  ;;  %v570_v13 = vld [vmem:[%s941_s9] sm:$0xff]   ;;  %v501_v14 = vld [vmem:[#allocation16] ss:$0 sm:$0xff]  ;;  %s755_s9 = scalar_lea.vmem %s482_s26, 128 }
  0x88   :  { %p756_p3 = scmp.ne.s32.totalorder %s482_s26, %s755_s9  ;;  %p761_p5 = scmp.lt.s32.totalorder %s755_s9, %s755_s9 }
  0x89   :  { %v170_v16 = vrot.slane %v169_v15, 2 }
  0x8a   :  { %p762_p6 = por %p761_p5, %p760_p4 }
  0x8b   :  { %v171_v17 = vadd.f32 %v170_v16, %v169_v15 }
  0x8c   :  { %p763_p7 = pnand %p762_p6, %p756_p3 }
  0x8d   :  { %v172_v18 = vrot.slane %v171_v17, 1 }
  0x8f   :  { %v173_v19 = vadd.f32 %v172_v18, %v171_v17 }
  0x91   :  { %v174_v20 = vmul.f32 0.125, %v173_v19 }
  0x93   :  { %v175_v21 = vadd.f32 1e-05, %v174_v20  ;;  %v505_v20 = vld [vmem:[%s942_s10] ss:$0 sm:$0xff] }
  0x95   :  { %571 = vrsqrt.f32 %v175_v21 }
  0xa2   :  { %v572_v26 = vpop.eup %571 }
  0xa3   :  { %v177_v27 = vmul.f32 %v572_v26, %v151_v24 }
  0xa5   :  { %v182_v28 = vrot.slane %v177_v27, %v181_v25 }
  0xa7   :  { %v184_v29 = vmul.f32 %v182_v28, %v165_v11 }
  0xa9   :  { %v185_v30 = vpack.c.bf16 %v184_v29, %v184_v29 }
  0xab   :  { %523 = vmatmul.mubr.msk.bf16.vlgmr.msra.gmra.mxu0 %vm155_vm1, %v185_v30 }
  0xac   :  { %538 = vmatprep.mubr.msk.bf16.mxu0 %vm799_vm0, %v798_v0  ;;  %535 = vmatpush3.bf16.msra.mxu0 %v567_v33 }
  0xad   :  { %536 = vmatprep.subr.bf16.mxu0 %v798_v0 }
  0xb0   :  { %537 = vmatpush3.bf16.msra.mxu0 %v568_v3 }
 0x16b   :  { %v235_v35 = vpop.f32.mrf.mxu0 }
 0x16c   :  { %v236_v36 = vadd.f32 %v494_v34, %v235_v35 }
 0x16d   :  { %v524_v37 = vpop.f32.mrf.mxu0 }
 0x16e   :  { %v241_v38 = vmax.f32 %v236_v36, 0.0 }
 0x16f   :  { %v238_v39 = vpop.f32.mrf.mxu0 }
 0x170   :  { %v249_v40 = vsel %vm248_vm2, %v241_v38, 0.0 }
 0x171   :  { %v250_v41 = vrot.slane %v249_v40, 4  ;;  %v525_v42 = vpop.f32.mrf.mxu0 }
 0x173   :  { %v251_v43 = vadd.f32 %v250_v41, %v249_v40 }
 0x175   :  { %v252_v44 = vrot.slane %v251_v43, 2 }
 0x177   :  { %v253_v45 = vadd.f32 %v252_v44, %v251_v43 }
 0x179   :  { %v254_v46 = vrot.slane %v253_v45, 1 }
 0x17b   :  { %v255_v47 = vadd.f32 %v254_v46, %v253_v45 }
 0x17d   :  { %v256_v48 = vmul.f32 0.125, %v255_v47 }
 0x17f   :  { %v257_v49 = vsub.f32 %v241_v38, %v256_v48 }
 0x181   :  { %v258_v50 = vmul.f32 %v257_v49, %v257_v49 }
 0x183   :  { %v259_v51 = vsel %vm248_vm2, %v258_v50, 0.0 }
 0x184   :  { %v260_v52 = vrot.slane %v259_v51, 4 }
 0x186   :  { %v261_v53 = vadd.f32 %v260_v52, %v259_v51 }
 0x188   :  { %v262_v54 = vrot.slane %v261_v53, 2 }
 0x18a   :  { %v263_v55 = vadd.f32 %v262_v54, %v261_v53 }
 0x18c   :  { %v264_v56 = vrot.slane %v263_v55, 1 }
 0x18e   :  { %v265_v57 = vadd.f32 %v264_v56, %v263_v55 }
 0x190   :  { %v266_v58 = vmul.f32 0.125, %v265_v57 }
 0x192   :  { %v267_v59 = vadd.f32 1e-05, %v266_v58 }
 0x194   :  { %573 = vrsqrt.f32 %v267_v59 }
 0x1a1   :  { %v574_v61 = vpop.eup %573 }
 0x1a2   :  { %v269_v62 = vmul.f32 %v574_v61, %v242_v60 }
 0x1a4   :  { %v274_v63 = vrot.slane %v269_v62, %v181_v25 }
 0x1a6   :  { %v276_v1 = vmul.f32 %v274_v63, %v257_v49 }
 0x1a8   :  { %v277_v2 = vpack.c.bf16 %v276_v1, %v276_v1 }
 0x1aa   :  { %531 = vmatmul.mubr.msk.bf16.vlgmr.msra.gmra.mxu1 %vm248_vm2, %v277_v2 }
 0x1ab   :  { %546 = vmatprep.mubr.msk.bf16.mxu1 %vm799_vm0, %v798_v0  ;;  %543 = vmatpush3.bf16.msra.mxu1 %v569_v4 }
 0x1ac   :  { %544 = vmatprep.subr.bf16.mxu1 %v798_v0 }
 0x1af   :  { %545 = vmatpush3.bf16.msra.mxu1 %v570_v13 }
 0x26a   :  { %v333_v6 = vpop.f32.mrf.mxu1 }
 0x26b   :  { %v334_v7 = vadd.f32 %v497_v5, %v333_v6 }
 0x26c   :  { %v532_v8 = vpop.f32.mrf.mxu1 }
 0x26d   :  { %v339_v9 = vmax.f32 %v334_v7, 0.0 }
 0x26e   :  { %v336_v10 = vpop.f32.mrf.mxu1 }
 0x26f   :  { %v350_v11 = vpack.c.bf16 %v339_v9, %v339_v9 }
 0x270   :  { %v533_v12 = vpop.f32.mrf.mxu1 }
 0x271   :  { %539 = vmatmul.mubr.msk.bf16.vlgmr.msra.gmra.mxu0 %vm248_vm2, %v350_v11 }
 0x331   :  { %v406_v15 = vpop.f32.mrf.mxu0 }
 0x332   :  { %v407_v16 = vadd.f32 %v501_v14, %v406_v15 }
 0x333   :  { %v540_v17 = vpop.f32.mrf.mxu0 }
 0x334   :  { %v412_v0 = vpack.c.bf16 %v407_v16, %v407_v16 }
 0x335   :  { %v409_v18 = vpop.f32.mrf.mxu0 }
 0x336   :  { %547 = vmatmul.mubr.msk.bf16.vlgmr.msra.gmra.mxu1 %vm248_vm2, %v412_v0 }
 0x337   :  { %v541_v19 = vpop.f32.mrf.mxu0 }
 0x3f6   :  { %v468_v21 = vpop.f32.mrf.mxu1 }
 0x3f7   :  { %v469_v22 = vadd.f32 %v505_v20, %v468_v21 }
 0x3f8   :  { %v548_v23 = vpop.f32.mrf.mxu1 }
 0x3f9   :  { %474 = vst [vmem:[#allocation17] sm:$0xff] %v469_v22 }
 0x3fa   :  { %v471_v24 = vpop.f32.mrf.mxu1 }
 0x3fb   :  { %766 = shalt.err (!%p763_p7)
}
 0x3fc   :  { %484 = dma.vmem_to_hbm [thread:$0]  %s482_s26, 128, %s943_s11, [#allocation4]   ;;  %v549_v25 = vpop.f32.mrf.mxu1 }
 0x3fd   :  { %785 = dma.done.wait [#allocation4], 128  }
 0x3fe   :  { %786 = vsyncadd [#allocation4], 4294967168 }
 0x3ff   :  { %488 = vsyncpa [#allocation3], 1 }
 0x400   :  { %489 = vsyncpa [#allocation6], 1 }
 0x401   :  { %490 = vsyncpa [#allocation9], 1 }
 0x402   :  { %491 = vsyncpa [#allocation12], 1 }
 0x403   :  { %492 = vsyncpa [#allocation15], 1 }
 0x404   :  { %493 = vsyncpa [#allocation4], 1 }

</bundles_post_ra>
